<compile_context>
chip_gen: v7x
topology: tpu7x:2x2x1
jax: 0.10.0
libtpu: 0.0.40
codegen_flags: <defaults>
</compile_context>

<pallas_src>
import jax
import jax.numpy as jnp
from jax.experimental import pallas as pl
from jax.experimental.pallas import tpu as pltpu


def _round_up(n, m):
    return ((n + m - 1) // m) * m


def _linear_kernel_t(x_ref, w_ref, b_ref, o_ref):
    """One batch tile of y.T = W @ x.T + b.

    x_ref: (in_f, TB)    f32  -- batch on the 128-lane axis (lane-dense)
    w_ref: (out_f, in_f) f32  -- resident whole-array block (constant index_map)
    b_ref: (out_f, 1)    f32  -- resident whole-array block
    o_ref: (out_f, TB)   f32  -- lane-dense output tile
    """
    x = x_ref[...]
    w = w_ref[...]
    b = b_ref[...]
    in_f = w.shape[1]

    # Fully unrolled VPU multiply-accumulate over the tiny K=10 contraction:
    # (out_f, 1) * (1, TB) broadcasts to (out_f, TB).  The MXU is deliberately
    # not used (it would run at <4% occupancy); the kernel is HBM-bound so the
    # VPU FMAs hide under the DMA pipeline.
    acc = w[:, 0:1] * x[0:1, :]
    for k in range(1, in_f):
        acc = acc + w[:, k : k + 1] * x[k : k + 1, :]

    o_ref[...] = (acc + b).astype(o_ref.dtype)


def final_linear(x, weight, bias, *, block_b=4096, min_pallas_batch=1024):
    """Pallas implementation of nn.Linear(10, 5): y = x @ weight.T + bias.

    x:      (B, 10) float32
    weight: (5, 10) float32  (PyTorch convention: (out_features, in_features))
    bias:   (5,)    float32
    returns (B, 5)  float32
    """
    B, in_f = x.shape
    out_f, in_f2 = weight.shape
    assert in_f == in_f2

    # Small-batch bypass: for tiny B the pallas_call launch + grid overhead
    # dominate; the fused XLA GEMV is strictly faster.
    if B < min_pallas_batch:
        return x @ weight.T + bias

    # Batch tile width on the lane axis: multiple of 128, no larger than the
    # (128-rounded) batch itself.
    tb = max(128, (block_b // 128) * 128)
    tb = min(tb, _round_up(B, 128))
    num_tiles = pl.cdiv(B, tb)
    b_pad = num_tiles * tb

    # Layout plumbing (done once per call in XLA, not per grid step):
    # put batch on the lane axis and pad it to a whole number of tiles.
    x_t = x.T                                   # (in_f, B)
    if b_pad != B:
        x_t = jnp.pad(x_t, ((0, 0), (0, b_pad - B)))
    b2d = bias.reshape(out_f, 1)                # (out_f, 1)

    y_t = pl.pallas_call(
        _linear_kernel_t,
        out_shape=jax.ShapeDtypeStruct((out_f, b_pad), jnp.float32),
        grid_spec=pltpu.PrefetchScalarGridSpec(
            num_scalar_prefetch=0,
            grid=(num_tiles,),
            in_specs=[
                pl.BlockSpec((in_f, tb), lambda i: (0, i)),       # x.T tile
                pl.BlockSpec((out_f, in_f), lambda i: (0, 0)),    # W resident
                pl.BlockSpec((out_f, 1), lambda i: (0, 0)),       # b resident
            ],
            out_specs=pl.BlockSpec((out_f, tb), lambda i: (0, i)),
        ),
        compiler_params=pltpu.CompilerParams(
            dimension_semantics=("parallel",),
        ),
    )(x_t, weight, b2d)

    # Back to PyTorch convention (B, out_f), dropping the pad columns.
    return y_t[:, :B].T


def init_params(key):
    """Deterministic init matching nn.Linear(10, 5) parameter shapes."""
    k_w, k_b = jax.random.split(key)
    # PyTorch default init: U(-1/sqrt(fan_in), 1/sqrt(fan_in)), fan_in = 10.
    bound = 1.0 / jnp.sqrt(10.0)
    weight = jax.random.uniform(k_w, (5, 10), jnp.float32, -bound, bound)
    bias = jax.random.uniform(k_b, (5,), jnp.float32, -bound, bound)
    return weight, bias


def adv_nelf_forward():
    # Faithful to the PyTorch module: forward(self) has an empty body.
    return None


if __name__ == "__main__":
    key = jax.random.PRNGKey(0)
    k_x, k_x2, k_p = jax.random.split(key, 3)

    weight, bias = init_params(k_p)

    # Pallas path: batch large enough to clear the small-batch bypass, and not
    # a multiple of the tile so partial-tile padding is exercised.
    B = 2000
    x = jax.random.normal(k_x, (B, 10), jnp.float32)
    y = final_linear(x, weight, bias, block_b=512)   # grid = (4,)
    y = jax.block_until_ready(y)

    y_ref = x @ weight.T + bias
    assert y.shape == (B, 5)
    assert jnp.allclose(y, y_ref, atol=1e-5, rtol=1e-5)

    # Small-batch bypass path (plain fused XLA GEMV).
    x_small = jax.random.normal(k_x2, (8, 10), jnp.float32)
    y_small = jax.block_until_ready(final_linear(x_small, weight, bias))
    assert y_small.shape == (8, 5)
    assert jnp.allclose(y_small, x_small @ weight.T + bias, atol=1e-5, rtol=1e-5)

    # The module-level forward() itself is a no-op.
    assert adv_nelf_forward() is None

    print("KERNEL_OK")
</pallas_src>

<mosaic_0001>
module attributes {stable_mosaic.version = 11 : i64} {
  func.func @_linear_kernel_t(%arg0: i32, %arg1: memref<10x512xf32, #tpu.memory_space<vmem>>, %arg2: memref<5x10xf32, #tpu.memory_space<vmem>>, %arg3: memref<5x1xf32, #tpu.memory_space<vmem>>, %arg4: memref<5x512xf32, #tpu.memory_space<vmem>>) attributes {dimension_semantics = [#tpu.dimension_semantics<parallel>], iteration_bounds = array<i64: 4>, scalar_prefetch = 0 : i64, scratch_operands = 0 : i64, tpu.core_type = #tpu.core_type<tc>, window_params = [{transform_indices = @transform_0, window_bounds = array<i64: 10, 512>}, {pipeline_mode = #tpu.pipeline_mode<synchronous>, transform_indices = @transform_1, window_bounds = array<i64: 5, 10>}, {pipeline_mode = #tpu.pipeline_mode<synchronous>, transform_indices = @transform_2, window_bounds = array<i64: 5, 1>}, {transform_indices = @transform_3, window_bounds = array<i64: 5, 512>}]} {
    %c0 = arith.constant 0 : index
    %c0_0 = arith.constant 0 : index
    %0 = vector.load %arg1[%c0, %c0_0] : memref<10x512xf32, #tpu.memory_space<vmem>>, vector<10x512xf32>
    %c0_1 = arith.constant 0 : index
    %c0_2 = arith.constant 0 : index
    %1 = vector.load %arg2[%c0_1, %c0_2] : memref<5x10xf32, #tpu.memory_space<vmem>>, vector<5x10xf32>
    %c0_3 = arith.constant 0 : index
    %c0_4 = arith.constant 0 : index
    %2 = vector.load %arg3[%c0_3, %c0_4] : memref<5x1xf32, #tpu.memory_space<vmem>>, vector<5x1xf32>
    %3 = vector.extract_strided_slice %1 {offsets = [0, 0], sizes = [5, 1], strides = [1, 1]} : vector<5x10xf32> to vector<5x1xf32>
    %4 = vector.extract_strided_slice %0 {offsets = [0, 0], sizes = [1, 512], strides = [1, 1]} : vector<10x512xf32> to vector<1x512xf32>
    %5 = vector.broadcast %3 : vector<5x1xf32> to vector<5x512xf32>
    %6 = vector.broadcast %4 : vector<1x512xf32> to vector<5x512xf32>
    %7 = arith.mulf %5, %6 : vector<5x512xf32>
    %8 = vector.extract_strided_slice %1 {offsets = [0, 1], sizes = [5, 1], strides = [1, 1]} : vector<5x10xf32> to vector<5x1xf32>
    %9 = vector.extract_strided_slice %0 {offsets = [1, 0], sizes = [1, 512], strides = [1, 1]} : vector<10x512xf32> to vector<1x512xf32>
    %10 = vector.broadcast %8 : vector<5x1xf32> to vector<5x512xf32>
    %11 = vector.broadcast %9 : vector<1x512xf32> to vector<5x512xf32>
    %12 = arith.mulf %10, %11 : vector<5x512xf32>
    %13 = arith.addf %7, %12 : vector<5x512xf32>
    %14 = vector.extract_strided_slice %1 {offsets = [0, 2], sizes = [5, 1], strides = [1, 1]} : vector<5x10xf32> to vector<5x1xf32>
    %15 = vector.extract_strided_slice %0 {offsets = [2, 0], sizes = [1, 512], strides = [1, 1]} : vector<10x512xf32> to vector<1x512xf32>
    %16 = vector.broadcast %14 : vector<5x1xf32> to vector<5x512xf32>
    %17 = vector.broadcast %15 : vector<1x512xf32> to vector<5x512xf32>
    %18 = arith.mulf %16, %17 : vector<5x512xf32>
    %19 = arith.addf %13, %18 : vector<5x512xf32>
    %20 = vector.extract_strided_slice %1 {offsets = [0, 3], sizes = [5, 1], strides = [1, 1]} : vector<5x10xf32> to vector<5x1xf32>
    %21 = vector.extract_strided_slice %0 {offsets = [3, 0], sizes = [1, 512], strides = [1, 1]} : vector<10x512xf32> to vector<1x512xf32>
    %22 = vector.broadcast %20 : vector<5x1xf32> to vector<5x512xf32>
    %23 = vector.broadcast %21 : vector<1x512xf32> to vector<5x512xf32>
    %24 = arith.mulf %22, %23 : vector<5x512xf32>
    %25 = arith.addf %19, %24 : vector<5x512xf32>
    %26 = vector.extract_strided_slice %1 {offsets = [0, 4], sizes = [5, 1], strides = [1, 1]} : vector<5x10xf32> to vector<5x1xf32>
    %27 = vector.extract_strided_slice %0 {offsets = [4, 0], sizes = [1, 512], strides = [1, 1]} : vector<10x512xf32> to vector<1x512xf32>
    %28 = vector.broadcast %26 : vector<5x1xf32> to vector<5x512xf32>
    %29 = vector.broadcast %27 : vector<1x512xf32> to vector<5x512xf32>
    %30 = arith.mulf %28, %29 : vector<5x512xf32>
    %31 = arith.addf %25, %30 : vector<5x512xf32>
    %32 = vector.extract_strided_slice %1 {offsets = [0, 5], sizes = [5, 1], strides = [1, 1]} : vector<5x10xf32> to vector<5x1xf32>
    %33 = vector.extract_strided_slice %0 {offsets = [5, 0], sizes = [1, 512], strides = [1, 1]} : vector<10x512xf32> to vector<1x512xf32>
    %34 = vector.broadcast %32 : vector<5x1xf32> to vector<5x512xf32>
    %35 = vector.broadcast %33 : vector<1x512xf32> to vector<5x512xf32>
    %36 = arith.mulf %34, %35 : vector<5x512xf32>
    %37 = arith.addf %31, %36 : vector<5x512xf32>
    %38 = vector.extract_strided_slice %1 {offsets = [0, 6], sizes = [5, 1], strides = [1, 1]} : vector<5x10xf32> to vector<5x1xf32>
    %39 = vector.extract_strided_slice %0 {offsets = [6, 0], sizes = [1, 512], strides = [1, 1]} : vector<10x512xf32> to vector<1x512xf32>
    %40 = vector.broadcast %38 : vector<5x1xf32> to vector<5x512xf32>
    %41 = vector.broadcast %39 : vector<1x512xf32> to vector<5x512xf32>
    %42 = arith.mulf %40, %41 : vector<5x512xf32>
    %43 = arith.addf %37, %42 : vector<5x512xf32>
    %44 = vector.extract_strided_slice %1 {offsets = [0, 7], sizes = [5, 1], strides = [1, 1]} : vector<5x10xf32> to vector<5x1xf32>
    %45 = vector.extract_strided_slice %0 {offsets = [7, 0], sizes = [1, 512], strides = [1, 1]} : vector<10x512xf32> to vector<1x512xf32>
    %46 = vector.broadcast %44 : vector<5x1xf32> to vector<5x512xf32>
    %47 = vector.broadcast %45 : vector<1x512xf32> to vector<5x512xf32>
    %48 = arith.mulf %46, %47 : vector<5x512xf32>
    %49 = arith.addf %43, %48 : vector<5x512xf32>
    %50 = vector.extract_strided_slice %1 {offsets = [0, 8], sizes = [5, 1], strides = [1, 1]} : vector<5x10xf32> to vector<5x1xf32>
    %51 = vector.extract_strided_slice %0 {offsets = [8, 0], sizes = [1, 512], strides = [1, 1]} : vector<10x512xf32> to vector<1x512xf32>
    %52 = vector.broadcast %50 : vector<5x1xf32> to vector<5x512xf32>
    %53 = vector.broadcast %51 : vector<1x512xf32> to vector<5x512xf32>
    %54 = arith.mulf %52, %53 : vector<5x512xf32>
    %55 = arith.addf %49, %54 : vector<5x512xf32>
    %56 = vector.extract_strided_slice %1 {offsets = [0, 9], sizes = [5, 1], strides = [1, 1]} : vector<5x10xf32> to vector<5x1xf32>
    %57 = vector.extract_strided_slice %0 {offsets = [9, 0], sizes = [1, 512], strides = [1, 1]} : vector<10x512xf32> to vector<1x512xf32>
    %58 = vector.broadcast %56 : vector<5x1xf32> to vector<5x512xf32>
    %59 = vector.broadcast %57 : vector<1x512xf32> to vector<5x512xf32>
    %60 = arith.mulf %58, %59 : vector<5x512xf32>
    %61 = arith.addf %55, %60 : vector<5x512xf32>
    %62 = vector.broadcast %2 : vector<5x1xf32> to vector<5x512xf32>
    %63 = arith.addf %61, %62 : vector<5x512xf32>
    %c0_5 = arith.constant 0 : index
    %c0_6 = arith.constant 0 : index
    %64 = vector.load %arg4[%c0_5, %c0_6] : memref<5x512xf32, #tpu.memory_space<vmem>>, vector<5x512xf32>
    tpu.vector_store %arg4[%c0_5, %c0_6], %63 {strides = array<i32>} : memref<5x512xf32, #tpu.memory_space<vmem>>, vector<5x512xf32>,
    return
  }
  func.func @transform_0(%arg0: i32) -> (i32, i32) {
    %c0_i32 = arith.constant 0 : i32
    %c0_i32_0 = arith.constant 0 : i32
    return %c0_i32, %arg0 : i32, i32
  }
  func.func @transform_1(%arg0: i32) -> (i32, i32) {
    %c0_i32 = arith.constant 0 : i32
    %c0_i32_0 = arith.constant 0 : i32
    %c0_i32_1 = arith.constant 0 : i32
    return %c0_i32, %c0_i32_0 : i32, i32
  }
  func.func @transform_2(%arg0: i32) -> (i32, i32) {
    %c0_i32 = arith.constant 0 : i32
    %c0_i32_0 = arith.constant 0 : i32
    %c0_i32_1 = arith.constant 0 : i32
    return %c0_i32, %c0_i32_0 : i32, i32
  }
  func.func @transform_3(%arg0: i32) -> (i32, i32) {
    %c0_i32 = arith.constant 0 : i32
    %c0_i32_0 = arith.constant 0 : i32
    return %c0_i32, %arg0 : i32, i32
  }
}

</mosaic_0001>

<bundles_post_ra>
// kernel: tpu_custom_call.1
= control target key start
LH: loop header
LB: loop body
LE: loop exit
PB: predicated region body
PF: predicated region fallthrough
CT: control target
= control target key end

     0   :  { %8 = vsyncpa [#allocation3], 0  ;;  %s1097_s0 = inlined_call_operand.hbm [shape: f32[10,2048], index: 0, kind: input, shape index: {}]   ;;  %s1098_s1 = inlined_call_operand.vmem [shape: f32[5,10], index: 1, kind: input, shape index: {}]   ;;  %s1099_s2 = inlined_call_operand.vmem [shape: f32[5,1], index: 2, kind: input, shape index: {}]   ;;  %s1100_s3 = inlined_call_operand.hbm [shape: f32[5,2048], index: 3, kind: output, shape index: {}]  }
   0x1   :  { %10 = vsyncpa [#allocation3 + $0x1], 0 }
   0x2   :  { %11 = vsyncpa [#allocation4], 0 }
   0x3   :  { %13 = vsyncpa [#allocation4 + $0x1], 0  ;;  %s796_s12 = smov 0   ;;  %s798_s13 = smov 0  }
   0x4   :  { %s800_s14 = smov 0   ;;  %s802_s15 = smov 0  }
   0x5 LB: > { %s817_s16 = sadd.s32 4294967295, %s759_s15   ;;  %s576_s17 = sadd.s32 4294967294, %s759_s15   ;;  %s759_s15 = sphi %s802_s15, %s1120_s15   ;;  %s755_s14 = sphi %s800_s14, %s1119_s14   ;;  %s751_s13 = sphi %s798_s13, %s1118_s13   ;;  %s747_s12 = sphi %s796_s12, %s1117_s12  }
   0x6   : > { %s821_s18 = sadd.s32 1, %s759_s15   ;;  %s26_s19 = sadd.s32 1, %s755_s14 }
   0x7   : > { %s23_s20 = ssub.s32 %s759_s15, %s821_s18  ;;  %p33_p0 = scmp.ne.s32.totalorder %s755_s14, %s751_s13 }
   0x8   : > { %p24_p1 = scmp.eq.s32.totalorder %s23_s20, 0  ;;  %p34_p2 = scmp.eq.s32.totalorder %s759_s15, 0 }
   0x9   : > { %p39_p3 = scmp.ne.s32.totalorder %s751_s13, %s747_s12  ;;  %p40_p4 = scmp.eq.s32.totalorder %s817_s16, 0 }
   0xa   : > { %s833_s21 = scalar_select %p24_p1, %s755_s14, %s26_s19  }
   0xb   : > { %p835_p5 = por %p34_p2, %p33_p0  ;;  %p839_p6 = por %p40_p4, %p39_p3 }
   0xc   : > { %p105_p7 = scmp.eq.s32.totalorder %s817_s16, 3  ;;  %p111_p8 = scmp.eq.s32.totalorder %s576_s17, 3 }
   0xd   : > { %p604_p9 = scmp.lt.s32.totalorder %s759_s15, 4  ;;  %s137_s26 = sand.u32 1, %s755_s14  }
   0xe   : > { %p845_p10 = por %p105_p7, %p33_p0  ;;  %p849_p11 = por %p111_p8, %p39_p3 }
   0xf   : > { %s590_s27 = sshll.u32 %s759_s15, 9  ;;  %s579_s28 = sshll.u32 %s137_s26, 6 }
  0x10   : > { %s1105_s24 = scalar_select %p845_p10, 1, 0 }
  0x11   : > { %s1106_s25 = scalar_select %p849_p11, 1, 0 }
  0x12   : > { %s858_s4 = scalar_lea.hbm %s1097_s0, %s590_s27  ;;  %s141_s5 = scalar_lea.vmem [#allocation2], %s579_s28 }
  0x13   : > { %s148_s6 = sshll.u32 %s141_s5, 4  ;;  %p862_p12 = pnand %p604_p9, %p835_p5  ;;  %s866_s6 = int_to_ptr.vmem [resolvable:$true] %s148_s6 }
  0x14   : > { %s869_s8 = scalar_lea.sflag [#allocation3], %s137_s26  ;;  %s663_s9 = scalar_lea.hbm %s858_s4, 1024 }
  0x15   : > { %p664_p0 = scmp.ne.s32.totalorder %s858_s4, %s663_s9  ;;  %p665_p1 = pneg %p862_p12 }
  0x16   : > { %s668_s17 = scalar_lea.hbm %s1097_s0, 4096  ;;  %p669_p4 = scmp.lt.u32.totalorder %s858_s4, %s1097_s0 }
  0x17   : > { %p666_p2 = pnand %p665_p1, %p664_p0  ;;  %p670_p5 = scmp.lt.u32.totalorder %s668_s17, %s663_s9 }
  0x18   : > { %p672_p8 = scmp.lt.u32.totalorder %s663_s9, %s858_s4 }
  0x19   : > { %p667_p3 = pneg %p666_p2  ;;  %p671_p7 = por %p670_p5, %p669_p4 }
  0x1b   : > { %p673_p9 = por %p672_p8, %p671_p7 }
  0x1d   : > { %p674_p13 = pnand %p673_p9, %p667_p3 }
  0x1f   : > { %677 = shalt.err (!%p674_p13)
}
  0x20   : > { %s678_s22 = scalar_lea.vmem %s866_s6, 1024  ;;  %s761_s26 = smov [#allocation2]  }
  0x21   : > { %p679_p0 = scmp.ne.s32.totalorder %s866_s6, %s678_s22  ;;  %s683_s27 = sshll.u32 %s761_s26, 4  ;;  %s684_s27 = int_to_ptr.vmem [resolvable:$false] %s683_s27 }
  0x22   : > { %s685_s28 = scalar_lea.vmem %s684_s27, 2048  ;;  %p686_p10 = scmp.lt.s32.totalorder %s866_s6, %s684_s27 }
  0x23   : > { %p681_p2 = pnand %p679_p0, %p665_p1  ;;  %p687_p4 = scmp.lt.s32.totalorder %s685_s28, %s678_s22 }
  0x25   : > { %p682_p11 = pneg %p681_p2  ;;  %p688_p5 = por %p687_p4, %p686_p10 }
  0x27   : > { %p689_p7 = pnand %p688_p5, %p682_p11 }
  0x29   : > { %692 = shalt.err (!%p689_p7)
}
  0x2a   : > { %s762_s29 = smov 2048   ;;  %s763_s30 = smov 512  }
  0x2b   : > { %s764_s5 = smov 32   ;;  %p156_p13 = scmp.lt.s32.totalorder %s759_s15, 5 }
  0x2c   : > { %599 = dma.hbm_to_vmem [thread:$0]  (!%p862_p12), %s858_s4, 1024, %s866_s6, %s869_s8, %s762_s29, %s763_s30, %s764_s5  }
  0x2d   : > { %p1108_p1 = scmp.ge.s32.totalorder %s759_s15, 1 }
  0x2f   : > { %p157_p3 = pnand %p1108_p1, %p156_p13 }
  0x31   : > { %160 = sbr.rel (%p157_p3) target bundleno = 237 (0xed), region = 32 }
  0x38   : > { %s901_s9 = sand.u32 1, %s751_s13  }
  0x39   : > { %s583_s10 = sshll.u32 %s901_s9, 6  ;;  %s163_s11 = scalar_lea.sflag [#allocation3], %s901_s9 }
  0x3a   : > { %s905_s17 = scalar_lea.vmem [#allocation2], %s583_s10 }
  0x3b   : > { %738 = dma.done.wait (%p839_p6), %s163_s11, 1024  }
  0x3c   : > { %740 = vsyncadd (%p839_p6), %s163_s11, 4294966272  ;;  %v765_v0 = vmov 2   ;;  %v766_v1 = vmov 0   ;;  %v199_v2 = vld [vmem:[%s1098_s1] sm:$0x1f]  ;;  %v767_v3 = vmov 3   ;;  %v206_v12 = vlaneseq }
  0x3d   : > { %653 = vset.pattern.permute.xlu1 %v765_v0  ;;  %651 = vset.pattern.permute.xlu0 %v766_v1  ;;  %v768_v4 = vmov 1   ;;  %v769_v5 = vmov 4   ;;  %v770_v6 = vmov 5   ;;  %v771_v7 = vmov 6   ;;  %v200_v11 = vld [vmem:[%s1099_s2] sm:$0x1f] }
  0x3e   : > { %255 = vperm.xlu1 %653, %v199_v2   ;;  %203 = vperm.xlu0 %651, %v199_v2   ;;  %v772_v8 = vmov 8   ;;  %v773_v9 = vmov 7   ;;  %v774_v10 = vmov 9   ;;  %v207_v13 = vshrl.u32 %v206_v12, 7  ;;  %v920_v15 = vld [vmem:[%s905_s17] sm:$0xff]  ;;  %v923_v16 = vld [vmem:[%s905_s17 + $0x8] sm:$0xff] }
  0x3f   : > { %v926_v17 = vld [vmem:[%s905_s17 + $0x10] sm:$0xff]  ;;  %v929_v18 = vld [vmem:[%s905_s17 + $0x18] sm:$0xff]  ;;  %v994_v52 = vld [vmem:[%s905_s17 + $0x20] sm:$0x3]  ;;  %s584_s8 = sshll.u32 %s901_s9, 5  ;;  %s591_s19 = sshll.u32 %s817_s16, 9 }
  0x40   : > { %v917_v14 = vsub.s32 2, %v207_v13  ;;  %v931_v19 = vsub.s32 0, %v207_v13  ;;  %v933_v20 = vsub.s32 3, %v207_v13  ;;  %v935_v21 = vsub.s32 1, %v207_v13  ;;  %v1005_v57 = vld [vmem:[%s905_s17 + $0x28] sm:$0x3]  ;;  %s1054_s28 = scalar_lea.hbm %s1100_s3, %s591_s19 }
  0x41   : > { %v951_v29 = vsub.s32 4, %v207_v13  ;;  %v959_v33 = vsub.s32 5, %v207_v13  ;;  %v967_v37 = vsub.s32 6, %v207_v13  ;;  %v975_v43 = vsub.s32 7, %v207_v13  ;;  %v1008_v58 = vld [vmem:[%s905_s17 + $0x30] sm:$0x3] }
  0x42   : > { %654 = vset.pattern.permute.xlu1 %v767_v3  ;;  %652 = vset.pattern.permute.xlu0 %v768_v4  ;;  %v261_v22 = vrot.slane %v920_v15, %v917_v14  ;;  %v265_v23 = vrot.slane %v923_v16, %v917_v14  ;;  %v269_v24 = vrot.slane %v926_v17, %v917_v14  ;;  %v1011_v59 = vld [vmem:[%s905_s17 + $0x38] sm:$0x3]  ;;  %s188_s20 = scalar_lea.vmem [#allocation5], %s584_s8  ;;  %s492_s16 = scalar_lea.sflag [#allocation4], %s901_s9 }
  0x43   : > { %283 = vperm.xlu1 %654, %v199_v2   ;;  %227 = vperm.xlu0 %652, %v199_v2   ;;  %v273_v25 = vrot.slane %v929_v18, %v917_v14  ;;  %v209_v26 = vrot.slane %v920_v15, %v931_v19  ;;  %v213_v27 = vrot.slane %v923_v16, %v931_v19  ;;  %s506_s22 = sshll.u32 %s188_s20, 4  ;;  %p1115_p10 = scmp.ne.s32.totalorder %s1105_s24, 0  ;;  %s1056_s22 = int_to_ptr.vmem [resolvable:$true] %s506_s22 }
  0x44   : > { %v217_v28 = vrot.slane %v926_v17, %v931_v19  ;;  %v221_v30 = vrot.slane %v929_v18, %v931_v19  ;;  %v289_v31 = vrot.slane %v920_v15, %v933_v20  ;;  %v293_v32 = vrot.slane %v923_v16, %v933_v20  ;;  %1109 = vst [vmem:[#allocation8_spill] sm:$0xff] %v1008_v58  ;;  %s693_s29 = scalar_lea.vmem %s1056_s22, 512  ;;  %s775_s30 = smov [#allocation5]  }
  0x45   : > { %v297_v34 = vrot.slane %v926_v17, %v933_v20  ;;  %v301_v35 = vrot.slane %v929_v18, %v933_v20  ;;  %v233_v36 = vrot.slane %v920_v15, %v935_v21  ;;  %v237_v40 = vrot.slane %v923_v16, %v935_v21  ;;  %p694_p6 = scmp.ne.s32.totalorder %s1056_s22, %s693_s29  ;;  %s697_s5 = sshll.u32 %s775_s30, 4  ;;  %s698_s5 = int_to_ptr.vmem [resolvable:$false] %s697_s5 }
  0x46   : > { %v241_v41 = vrot.slane %v926_v17, %v935_v21  ;;  %v245_v42 = vrot.slane %v929_v18, %v935_v21  ;;  %v317_v44 = vrot.slane %v920_v15, %v951_v29  ;;  %v321_v45 = vrot.slane %v923_v16, %v951_v29  ;;  %s699_s10 = scalar_lea.vmem %s698_s5, 1024  ;;  %p700_p8 = scmp.lt.s32.totalorder %s1056_s22, %s698_s5 }
  0x47   : > { %655 = vset.pattern.permute.xlu1 %v769_v5  ;;  %656 = vset.pattern.permute.xlu0 %v770_v6  ;;  %v325_v46 = vrot.slane %v926_v17, %v951_v29  ;;  %v329_v47 = vrot.slane %v929_v18, %v951_v29  ;;  %v345_v48 = vrot.slane %v920_v15, %v959_v33  ;;  %p695_p11 = pnand %p694_p6, %p1115_p10  ;;  %p701_p9 = scmp.lt.s32.totalorder %s699_s10, %s693_s29 }
  0x48   : > { %311 = vperm.xlu1 %655, %v199_v2   ;;  %339 = vperm.xlu0 %656, %v199_v2   ;;  %v349_v49 = vrot.slane %v923_v16, %v959_v33  ;;  %v353_v50 = vrot.slane %v926_v17, %v959_v33  ;;  %v357_v51 = vrot.slane %v929_v18, %v959_v33 }
  0x49   : > { %v373_v53 = vrot.slane %v920_v15, %v967_v37  ;;  %v377_v54 = vrot.slane %v923_v16, %v967_v37  ;;  %v381_v55 = vrot.slane %v926_v17, %v967_v37  ;;  %v385_v56 = vrot.slane %v929_v18, %v967_v37  ;;  %p696_p12 = pneg %p695_p11  ;;  %p702_p0 = por %p701_p9, %p700_p8 }
  0x4a   : > { %v429_v6 = vrot.slane %v994_v52, %v931_v19 }
  0x4b   : > { %p703_p2 = pnand %p702_p0, %p696_p12 }
  0x4c   : > { %657 = vset.pattern.permute.xlu1 %v771_v7  ;;  %659 = vset.pattern.permute.xlu0 %v772_v8  ;;  %v433_v7 = vrot.slane %v1005_v57, %v931_v19  ;;  %v437_v8 = vrot.slane %v1008_v58, %v931_v19 }
  0x4d   : > { %367 = vperm.xlu1 %657, %v199_v2   ;;  %423 = vperm.xlu0 %659, %v199_v2  }
  0x51   : > { %658 = vset.pattern.permute.xlu1 %v773_v9  ;;  %662 = vset.pattern.permute.xlu0 %v766_v1  ;;  %v441_v9 = vrot.slane %v1011_v59, %v931_v19 }
  0x52   : > { %395 = vperm.xlu1 %658, %v199_v2  }
  0x56   : > { %660 = vset.pattern.permute.xlu1 %v774_v10 }
  0x57   : > { %451 = vperm.xlu1 %660, %v199_v2  }
  0x5b   : > { %661 = vset.pattern.permute.xlu1 %v766_v1 }
  0x5c   : > { %480 = vperm.xlu1 %661, %v200_v11  }
  0xbd   : > { %v256_v38 = vpop.permute.xlu1 %255  ;;  %v204_v39 = vpop.permute.xlu0 %203 }
  0xbe   : > { %v222_v0 = vmul.f32 %v209_v26, %v204_v39  ;;  %v223_v1 = vmul.f32 %v213_v27, %v204_v39  ;;  %v224_v2 = vmul.f32 %v217_v28, %v204_v39  ;;  %v225_v3 = vmul.f32 %v221_v30, %v204_v39 }
  0xbf   : > { %v274_v14 = vmul.f32 %v261_v22, %v256_v38  ;;  %v275_v20 = vmul.f32 %v265_v23, %v256_v38  ;;  %v276_v26 = vmul.f32 %v269_v24, %v256_v38  ;;  %v277_v27 = vmul.f32 %v273_v25, %v256_v38 }
  0xc2   : > { %v284_v4 = vpop.permute.xlu1 %283  ;;  %v228_v5 = vpop.permute.xlu0 %227 }
  0xc3   : > { %v246_v10 = vmul.f32 %v233_v36, %v228_v5  ;;  %v247_v11 = vmul.f32 %v237_v40, %v228_v5  ;;  %v248_v12 = vmul.f32 %v241_v41, %v228_v5  ;;  %v249_v13 = vmul.f32 %v245_v42, %v228_v5 }
  0xc4   : > { %v302_v37 = vmul.f32 %v289_v31, %v284_v4  ;;  %v303_v39 = vmul.f32 %v293_v32, %v284_v4  ;;  %v304_v63 = vmul.f32 %v297_v34, %v284_v4  ;;  %v305_v62 = vmul.f32 %v301_v35, %v284_v4 }
  0xc5   : > { %v250_v28 = vadd.f32 %v246_v10, %v222_v0  ;;  %v251_v29 = vadd.f32 %v247_v11, %v223_v1  ;;  %v252_v30 = vadd.f32 %v248_v12, %v224_v2  ;;  %v253_v33 = vadd.f32 %v249_v13, %v225_v3 }
  0xc7   : > { %v312_v61 = vpop.permute.xlu1 %311  ;;  %v278_v60 = vadd.f32 %v274_v14, %v250_v28  ;;  %v279_v58 = vadd.f32 %v275_v20, %v251_v29  ;;  %v280_v19 = vadd.f32 %v276_v26, %v252_v30  ;;  %v281_v36 = vadd.f32 %v277_v27, %v253_v33  ;;  %v340_v40 = vpop.permute.xlu0 %339 }
  0xc8   : > { %v330_v41 = vmul.f32 %v317_v44, %v312_v61  ;;  %v331_v42 = vmul.f32 %v321_v45, %v312_v61  ;;  %v332_v22 = vmul.f32 %v325_v46, %v312_v61  ;;  %v333_v23 = vmul.f32 %v329_v47, %v312_v61 }
  0xc9   : > { %v306_v24 = vadd.f32 %v302_v37, %v278_v60  ;;  %v307_v25 = vadd.f32 %v303_v39, %v279_v58  ;;  %v308_v38 = vadd.f32 %v304_v63, %v280_v19  ;;  %v309_v0 = vadd.f32 %v305_v62, %v281_v36 }
  0xca   : > { %v358_v1 = vmul.f32 %v345_v48, %v340_v40  ;;  %v359_v2 = vmul.f32 %v349_v49, %v340_v40  ;;  %v360_v31 = vmul.f32 %v353_v50, %v340_v40  ;;  %v361_v32 = vmul.f32 %v357_v51, %v340_v40 }
  0xcb   : > { %v334_v34 = vadd.f32 %v330_v41, %v306_v24  ;;  %v335_v35 = vadd.f32 %v331_v42, %v307_v25  ;;  %v336_v3 = vadd.f32 %v332_v22, %v308_v38  ;;  %v337_v4 = vadd.f32 %v333_v23, %v309_v0 }
  0xcc   : > { %v368_v5 = vpop.permute.xlu1 %367  ;;  %v424_v45 = vpop.permute.xlu0 %423  ;;  %v457_v20 = vrot.slane %v994_v52, %v935_v21  ;;  %v461_v26 = vrot.slane %v1005_v57, %v935_v21 }
  0xcd   : > { %v386_v10 = vmul.f32 %v373_v53, %v368_v5  ;;  %v387_v11 = vmul.f32 %v377_v54, %v368_v5  ;;  %v388_v12 = vmul.f32 %v381_v55, %v368_v5  ;;  %v389_v44 = vmul.f32 %v385_v56, %v368_v5 }
  0xce   : > { %v362_v46 = vadd.f32 %v358_v1, %v334_v34  ;;  %v363_v47 = vadd.f32 %v359_v2, %v335_v35  ;;  %v364_v60 = vadd.f32 %v360_v31, %v336_v3  ;;  %v365_v58 = vadd.f32 %v361_v32, %v337_v4 }
  0xcf   : > { %v442_v61 = vmul.f32 %v429_v6, %v424_v45  ;;  %v443_v62 = vmul.f32 %v433_v7, %v424_v45  ;;  %v444_v48 = vmul.f32 %v437_v8, %v424_v45  ;;  %v445_v49 = vmul.f32 %v441_v9, %v424_v45 }
  0xd0   : > { %v390_v50 = vadd.f32 %v386_v10, %v362_v46  ;;  %v391_v51 = vadd.f32 %v387_v11, %v363_v47  ;;  %v392_v63 = vadd.f32 %v388_v12, %v364_v60  ;;  %v393_v13 = vadd.f32 %v389_v44, %v365_v58 }
  0xd1   : > { %v396_v14 = vpop.permute.xlu1 %395  ;;  %v1110_v53 = vrot.slane %v920_v15, %v975_v43  ;;  %v1111_v55 = vrot.slane %v923_v16, %v975_v43  ;;  %v1112_v6 = vrot.slane %v926_v17, %v975_v43  ;;  %v1113_v8 = vrot.slane %v929_v18, %v975_v43  ;;  %v1114_v15 = vld [vmem:[#allocation8_spill] sm:$0xff] }
  0xd2   : > { %v465_v27 = vrot.slane %v1114_v15, %v935_v21  ;;  %v469_v16 = vrot.slane %v1011_v59, %v935_v21 }
  0xd3   : > { %v414_v54 = vmul.f32 %v1110_v53, %v396_v14  ;;  %v415_v56 = vmul.f32 %v1111_v55, %v396_v14  ;;  %v416_v7 = vmul.f32 %v1112_v6, %v396_v14  ;;  %v417_v9 = vmul.f32 %v1113_v8, %v396_v14 }
  0xd5   : > { %v418_v28 = vadd.f32 %v414_v54, %v390_v50  ;;  %v419_v17 = vadd.f32 %v415_v56, %v391_v51  ;;  %v420_v29 = vadd.f32 %v416_v7, %v392_v63  ;;  %v421_v30 = vadd.f32 %v417_v9, %v393_v13 }
  0xd6   : > { %v452_v52 = vpop.permute.xlu1 %451 }
  0xd7   : > { %v446_v18 = vadd.f32 %v442_v61, %v418_v28  ;;  %v447_v43 = vadd.f32 %v443_v62, %v419_v17  ;;  %v448_v33 = vadd.f32 %v444_v48, %v420_v29  ;;  %v449_v37 = vadd.f32 %v445_v49, %v421_v30 }
  0xd8   : > { %v470_v39 = vmul.f32 %v457_v20, %v452_v52  ;;  %v471_v19 = vmul.f32 %v461_v26, %v452_v52  ;;  %v472_v57 = vmul.f32 %v465_v27, %v452_v52  ;;  %v473_v36 = vmul.f32 %v469_v16, %v452_v52 }
  0xda   : > { %v474_v40 = vadd.f32 %v470_v39, %v446_v18  ;;  %v475_v41 = vadd.f32 %v471_v19, %v447_v43  ;;  %v476_v42 = vadd.f32 %v472_v57, %v448_v33  ;;  %v477_v21 = vadd.f32 %v473_v36, %v449_v37 }
  0xdb   : > { %v481_v59 = vpop.permute.xlu1 %480 }
  0xdc   : > { %v483_v22 = vadd.f32 %v481_v59, %v474_v40  ;;  %v484_v23 = vadd.f32 %v481_v59, %v475_v41  ;;  %v485_v24 = vadd.f32 %v481_v59, %v476_v42  ;;  %v486_v25 = vadd.f32 %v481_v59, %v477_v21 }
  0xde   : > { %487 = vst [vmem:[%s188_s20] sm:$0x1f] %v483_v22  ;;  %488 = vst [vmem:[%s188_s20 + $0x8] sm:$0x1f] %v484_v23 }
  0xdf   : > { %489 = vst [vmem:[%s188_s20 + $0x10] sm:$0x1f] %v485_v24  ;;  %490 = vst [vmem:[%s188_s20 + $0x18] sm:$0x1f] %v486_v25 }
  0xe0   : > { %706 = shalt.err (!%p703_p2)
}
  0xe1   : > { %s707_s9 = scalar_lea.hbm %s1054_s28, 512  ;;  %s711_s4 = scalar_lea.hbm %s1100_s3, 2048 }
  0xe2   : > { %p708_p4 = scmp.ne.s32.totalorder %s1054_s28, %s707_s9  ;;  %p712_p13 = scmp.lt.u32.totalorder %s1054_s28, %s1100_s3 }
  0xe3   : > { %p713_p1 = scmp.lt.u32.totalorder %s711_s4, %s707_s9  ;;  %p715_p6 = scmp.lt.u32.totalorder %s707_s9, %s1054_s28 }
  0xe4   : > { %p709_p5 = pnand %p708_p4, %p1115_p10 }
  0xe5   : > { %p714_p3 = por %p713_p1, %p712_p13 }
  0xe6   : > { %p710_p7 = pneg %p709_p5 }
  0xe7   : > { %p716_p11 = por %p715_p6, %p714_p3 }
  0xe9   : > { %p717_p12 = pnand %p716_p11, %p710_p7 }
  0xeb   : > { %720 = shalt.err (!%p717_p12)
}
  0xec   : > { %594 = dma.vmem_to_hbm [thread:$0]  (%p1115_p10), %s1056_s22, 512, %s1054_s28, %s492_s16  }
  0xed PF: > { %p605_p8 = scmp.ge.s32.totalorder %s759_s15, 2  ;;  %s518_s7 = sand.u32 1, %s747_s12  }
  0xee   : > { %p1116_p9 = scmp.ne.s32.totalorder %s1106_s25, 0  ;;  %s519_s8 = scalar_lea.sflag [#allocation4], %s518_s7 }
  0xf0   : > { %p601_p0 = pnand %p605_p8, %p1116_p9 }
  0xf2   : > { %742 = dma.done.wait (!%p601_p0), %s519_s8, 512  }
  0xf3   : > { %744 = vsyncadd (!%p601_p0), %s519_s8, 4294966784  ;;  %p16_p2 = scmp.ge.s32.totalorder %s821_s18, 6   ;;  %s1117_s12 = smov %s751_s13 }
  0xf4   : > { %s1118_s13 = smov %s755_s14  ;;  %s1119_s14 = smov %s833_s21 }
  0xf5   : > { %s1120_s15 = smov %s821_s18  ;;  %18 = sbr.rel (!%p16_p2) target bundleno = 5 (0x5), region = 77 }
  0xfc   :  { %524 = vsyncpa [#allocation3], 1 }
  0xfd   :  { %526 = vsyncpa [#allocation3 + $0x1], 1 }
  0xfe   :  { %527 = vsyncpa [#allocation4], 1 }
  0xff   :  { %529 = vsyncpa [#allocation4 + $0x1], 1 }

</bundles_post_ra>
